<compile_context>
chip_gen: v5e
topology: v5e:2x2
jax: 0.10.0
libtpu: 0.0.40
codegen_flags: <defaults>
</compile_context>

<pallas_src>
import jax
import jax.numpy as jnp
from jax import lax
from jax.experimental import pallas as pl
from jax.experimental.pallas import tpu as pltpu

B = 8      # per-pair batch
S = 8      # sequence length
H = 128    # hidden size
V = 32     # vocab size
L = 4      # synthetic backbone depth -> hidden_states[0..L]

_VMEM = pl.BlockSpec(memory_space=pltpu.MemorySpace.VMEM)


# ----------------------------------------------------------------------------
# Shared in-kernel helper: embedding gather + L tanh layers + last_token_2l pool
# ----------------------------------------------------------------------------
def _backbone_pool(ids_col, tab_ref, w_ref):
    """ids_col: (M,1) int32; tab_ref: (V,H) bf16; w_ref: (L,H,H) bf16.

    Returns (M,H) f32 pooled embedding = (hidden_states[1] + hidden_states[-1]) / 2.
    """
    M = ids_col.shape[0]
    # Embedding lookup as a bf16 one-hot matmul on the MXU (no gather).
    iota = lax.broadcasted_iota(jnp.int32, (M, V), 1)
    onehot = (iota == ids_col).astype(jnp.bfloat16)
    x = jnp.dot(onehot, tab_ref[...], preferred_element_type=jnp.float32)  # h0

    h1 = None
    for l in range(L):                                  # unrolled, L = 4
        # bf16 MXU operands, f32 accumulation; tanh kept f32 for v5e portability.
        x = jnp.tanh(jnp.dot(x.astype(jnp.bfloat16), w_ref[l],
                             preferred_element_type=jnp.float32))
        if l == 0:
            h1 = x                                      # hidden_states[1]
    # last_token_2l pooling.
    return (h1 + x) * 0.5


# ----------------------------------------------------------------------------
# Fused training kernel: backbone (both sides) + pooling + CoSENT loss
# One grid step == one pair-batch of size B.
# ----------------------------------------------------------------------------
def _fused_train_kernel(ids_a_ref, ids_b_ref, tab_ref, w_ref, lab_ref,
                        emb_ref, loss_ref):
    # Last-token ids of both sides (the reference pools hidden[:, -1] unconditionally).
    ids = jnp.concatenate([ids_a_ref[0], ids_b_ref[0]], axis=0)     # (2B, S)
    ids_col = ids[:, S - 1:S]                                       # (2B, 1)

    emb = _backbone_pool(ids_col, tab_ref, w_ref)                   # (2B, H) f32
    emb_ref[0] = emb                                                # single dense store

    emb1 = emb[:B]
    emb2 = emb[B:]

    # F.cosine_similarity(emb1, emb2, dim=1, eps=1e-8) * 20
    # NOTE: torch clamps each norm with eps; clamping the product only differs
    # for near-zero embeddings.
    dotp = jnp.sum(emb1 * emb2, axis=1, keepdims=True)              # (B, 1)
    n1 = jnp.sqrt(jnp.sum(emb1 * emb1, axis=1, keepdims=True))
    n2 = jnp.sqrt(jnp.sum(emb2 * emb2, axis=1, keepdims=True))
    cos = dotp / jnp.maximum(n1 * n2, 1e-8) * 20.0                  # (B, 1)

    # Pairwise cos[i] - cos[j] via rank-1 matmuls (MXU idle here; avoids XLU transpose).
    ones_col = jnp.ones_like(cos)
    dn = (((1,), (1,)), ((), ()))
    cos_i = lax.dot_general(cos, ones_col, dimension_numbers=dn,
                            preferred_element_type=jnp.float32)     # (B, B)
    cos_j = lax.dot_general(ones_col, cos, dimension_numbers=dn,
                            preferred_element_type=jnp.float32)     # (B, B)
    diff = cos_i - cos_j

    # Label broadcasts derived in-kernel from the single (B,1) label column.
    lab = lab_ref[0]                                                # (B, 1) f32
    lab_i = lax.dot_general(lab, ones_col, dimension_numbers=dn,
                            preferred_element_type=jnp.float32)
    lab_j = lax.dot_general(ones_col, lab, dimension_numbers=dn,
                            preferred_element_type=jnp.float32)
    scores = jnp.where(lab_i < lab_j, diff, diff - 1e12)            # single select

    # Reference concatenates an EMPTY zeros(0) tensor -> logsumexp over the
    # B*B pair scores only.
    mx = jnp.max(scores)
    loss = mx + jnp.log(jnp.sum(jnp.exp(scores - mx)))
    loss_ref[...] = jnp.full((1, 1, 1), loss, dtype=jnp.float32)


def cosent_forward(ids_a, ids_b, emb_table, w_stack, labels):
    """ids_a/ids_b: (N,B,S) int32, labels: (N,B).

    Returns (loss (N,), emb1 (N,B,H), emb2 (N,B,H)).
    """
    N = ids_a.shape[0]
    lab = labels.astype(jnp.float32).reshape(N, B, 1)
    emb, loss = pl.pallas_call(
        _fused_train_kernel,
        out_shape=(jax.ShapeDtypeStruct((N, 2 * B, H), jnp.float32),
                   jax.ShapeDtypeStruct((N, 1, 1), jnp.float32)),
        grid=(N,),
        in_specs=[
            pl.BlockSpec((1, B, S), lambda n: (n, 0, 0)),          # ids side A
            pl.BlockSpec((1, B, S), lambda n: (n, 0, 0)),          # ids side B
            pl.BlockSpec((V, H), lambda n: (0, 0)),                # table: VMEM-resident
            pl.BlockSpec((L, H, H), lambda n: (0, 0, 0)),          # weights: VMEM-resident
            pl.BlockSpec((1, B, 1), lambda n: (n, 0, 0)),          # labels
        ],
        out_specs=(
            pl.BlockSpec((1, 2 * B, H), lambda n: (n, 0, 0)),      # merged emb output
            pl.BlockSpec((1, 1, 1), lambda n: (n, 0, 0)),          # per-step loss
        ),
        compiler_params=pltpu.CompilerParams(
            dimension_semantics=("parallel",)),                    # v7x: 2 TCs split N
    )(ids_a, ids_b, emb_table, w_stack, lab)
    return loss[:, 0, 0], emb[:, :B, :], emb[:, B:, :]


# ----------------------------------------------------------------------------
# Embedding-only kernel (inference path: input_ids_b is None)
# ----------------------------------------------------------------------------
def _embed_kernel(ids_ref, tab_ref, w_ref, emb_ref):
    ids_col = ids_ref[...][:, S - 1:S]                              # (rows, 1)
    emb_ref[...] = _backbone_pool(ids_col, tab_ref, w_ref)


def embed_forward(ids, emb_table, w_stack):
    rows = ids.shape[0]
    return pl.pallas_call(
        _embed_kernel,
        out_shape=jax.ShapeDtypeStruct((rows, H), jnp.float32),
        in_specs=[_VMEM, _VMEM, _VMEM],
        out_specs=_VMEM,
    )(ids, emb_table, w_stack)


# ----------------------------------------------------------------------------
# Module wrapper (glue): synthetic GPT backbone + forward pass semantics
# ----------------------------------------------------------------------------
class GPTCosentPallas:
    """embedding_method='last_token_2l', disable_kv_cache=True (no cache used)."""

    def __init__(self, key):
        k_emb, k_w = jax.random.split(key, 2)
        # Parameters stored bf16 once (halves table/weight DMA; f32 accumulation
        # happens in-kernel on the MXU).
        self.emb_table = (0.02 * jax.random.normal(k_emb, (V, H), jnp.float32)
                          ).astype(jnp.bfloat16)
        self.w_stack = (jax.random.normal(k_w, (L, H, H), jnp.float32)
                        / jnp.sqrt(float(H))).astype(jnp.bfloat16)

    def get_embeddings(self, input_ids, attention_mask=None):
        # TODO(synk): the real GPT backbone (self-attention, masking, KV cache) is an
        # external module in the reference; this synthetic stack is token-wise, so the
        # attention_mask is unused (the reference pools hidden[:, -1] unconditionally).
        return embed_forward(input_ids.astype(jnp.int32), self.emb_table, self.w_stack)

    def forward(self, input_ids, attention_mask=None, input_ids_b=None,
                attention_mask_b=None, labels=None, ddp=False):
        if input_ids_b is None or labels is None:
            return self.get_embeddings(input_ids, attention_mask)
        single = (input_ids.ndim == 2)
        ids_a = input_ids[None] if single else input_ids             # (N, B, S)
        ids_b = input_ids_b[None] if single else input_ids_b
        lab = labels[None] if single else labels                     # (N, B)
        # TODO(synk): ddp all-gather path (torch.distributed) is not applicable here.
        loss, emb1, emb2 = cosent_forward(ids_a.astype(jnp.int32),
                                          ids_b.astype(jnp.int32),
                                          self.emb_table, self.w_stack, lab)
        if single:
            return loss[0], emb1[0], emb2[0]
        return loss, emb1, emb2


if __name__ == "__main__":
    key = jax.random.PRNGKey(0)
    k1, k2, k3, k4, k5, k6, kp = jax.random.split(key, 7)
    model = GPTCosentPallas(kp)

    # --- Single pair-batch (matches the PyTorch module's forward signature) ---
    input_ids = jax.random.randint(k1, (B, S), 0, V)
    input_ids_b = jax.random.randint(k2, (B, S), 0, V)
    attention_mask = jnp.ones((B, S), jnp.int32)
    labels = jax.random.randint(k3, (B,), 0, 3).astype(jnp.float32)

    loss, emb1, emb2 = model.forward(input_ids, attention_mask,
                                     input_ids_b, attention_mask, labels, ddp=False)
    jax.block_until_ready((loss, emb1, emb2))
    assert loss.shape == () and emb1.shape == (B, H) and emb2.shape == (B, H)
    assert bool(jnp.isfinite(loss))

    # --- Inference path (input_ids_b is None): embeddings only ---
    emb = model.forward(input_ids, attention_mask)
    jax.block_until_ready(emb)
    assert emb.shape == (B, H)

    # --- Batched path: N pair-batches in one gridded launch (weights resident,
    #     "parallel" grid axis -> v7x megacore) ---
    N = 2
    ids_a = jax.random.randint(k4, (N, B, S), 0, V)
    ids_b = jax.random.randint(k5, (N, B, S), 0, V)
    labs = jax.random.randint(k6, (N, B), 0, 3).astype(jnp.float32)
    losses, e1, e2 = model.forward(ids_a, None, ids_b, None, labs, ddp=False)
    jax.block_until_ready((losses, e1, e2))
    assert losses.shape == (N,) and e1.shape == (N, B, H) and e2.shape == (N, B, H)

    print("KERNEL_OK")
</pallas_src>

<mosaic_0001>
module attributes {stable_mosaic.version = 11 : i64} {
  func.func @_fused_train_kernel(%arg0: i32, %arg1: memref<1x8x8xi32, #tpu.memory_space<vmem>>, %arg2: memref<1x8x8xi32, #tpu.memory_space<vmem>>, %arg3: memref<32x128xbf16, #tpu.memory_space<vmem>>, %arg4: memref<4x128x128xbf16, #tpu.memory_space<vmem>>, %arg5: memref<1x8x1xf32, #tpu.memory_space<vmem>>, %arg6: memref<1x16x128xf32, #tpu.memory_space<vmem>>, %arg7: memref<1x1x1xf32, #tpu.memory_space<vmem>>) attributes {dimension_semantics = [#tpu.dimension_semantics<parallel>], iteration_bounds = array<i64: 1>, scalar_prefetch = 0 : i64, scratch_operands = 0 : i64, tpu.core_type = #tpu.core_type<tc>, window_params = [{transform_indices = @transform_0, window_bounds = array<i64: 1, 8, 8>}, {transform_indices = @transform_1, window_bounds = array<i64: 1, 8, 8>}, {pipeline_mode = #tpu.pipeline_mode<synchronous>, transform_indices = @transform_2, window_bounds = array<i64: 32, 128>}, {pipeline_mode = #tpu.pipeline_mode<synchronous>, transform_indices = @transform_3, window_bounds = array<i64: 4, 128, 128>}, {transform_indices = @transform_4, window_bounds = array<i64: 1, 8, 1>}, {transform_indices = @transform_5, window_bounds = array<i64: 1, 16, 128>}, {transform_indices = @transform_6, window_bounds = array<i64: 1, 1, 1>}]} {
    %c0 = arith.constant 0 : index
    %c0_0 = arith.constant 0 : index
    %c0_1 = arith.constant 0 : index
    %0 = vector.load %arg1[%c0, %c0_0, %c0_1] : memref<1x8x8xi32, #tpu.memory_space<vmem>>, vector<1x8x8xi32>
    %1 = vector.shape_cast %0 : vector<1x8x8xi32> to vector<8x8xi32>
    %c0_2 = arith.constant 0 : index
    %c0_3 = arith.constant 0 : index
    %c0_4 = arith.constant 0 : index
    %2 = vector.load %arg2[%c0_2, %c0_3, %c0_4] : memref<1x8x8xi32, #tpu.memory_space<vmem>>, vector<1x8x8xi32>
    %3 = vector.shape_cast %2 : vector<1x8x8xi32> to vector<8x8xi32>
    %4 = tpu.concatenate %1, %3 in 0 : vector<8x8xi32>, vector<8x8xi32> -> vector<16x8xi32>
    %5 = vector.extract_strided_slice %4 {offsets = [0, 7], sizes = [16, 1], strides = [1, 1]} : vector<16x8xi32> to vector<16x1xi32>
    %6 = tpu.iota {dimensions = array<i32: 1>} : vector<16x32xi32>
    %7 = vector.broadcast %5 : vector<16x1xi32> to vector<16x32xi32>
    %8 = arith.cmpi eq, %6, %7 : vector<16x32xi32>
    %9 = arith.extui %8 : vector<16x32xi1> to vector<16x32xi32>
    %10 = arith.sitofp %9 : vector<16x32xi32> to vector<16x32xf32>
    %11 = arith.truncf %10 : vector<16x32xf32> to vector<16x32xbf16>
    %c0_5 = arith.constant 0 : index
    %c0_6 = arith.constant 0 : index
    %12 = vector.load %arg3[%c0_5, %c0_6] : memref<32x128xbf16, #tpu.memory_space<vmem>>, vector<32x128xbf16>
    %cst = arith.constant dense<0.000000e+00> : vector<16x128xf32>
    %13 = tpu.matmul %11, %12, %cst {dimension_numbers = #tpu.dot_dimension_numbers<[1], [0], [0], [1], [0, 0, 1, 1], [], []>} : vector<16x32xbf16>, vector<32x128xbf16>, vector<16x128xf32> -> vector<16x128xf32>
    %14 = arith.truncf %13 : vector<16x128xf32> to vector<16x128xbf16>
    %c0_7 = arith.constant 0 : index
    %c0_8 = arith.constant 0 : index
    %c0_9 = arith.constant 0 : index
    %15 = vector.load %arg4[%c0_7, %c0_8, %c0_9] : memref<4x128x128xbf16, #tpu.memory_space<vmem>>, vector<1x128x128xbf16>
    %16 = vector.shape_cast %15 : vector<1x128x128xbf16> to vector<128x128xbf16>
    %cst_10 = arith.constant dense<0.000000e+00> : vector<16x128xf32>
    %17 = tpu.matmul %14, %16, %cst_10 {dimension_numbers = #tpu.dot_dimension_numbers<[1], [0], [0], [1], [0, 0, 1, 1], [], []>} : vector<16x128xbf16>, vector<128x128xbf16>, vector<16x128xf32> -> vector<16x128xf32>
    %18 = math.tanh %17 : vector<16x128xf32>
    %19 = arith.truncf %18 : vector<16x128xf32> to vector<16x128xbf16>
    %c1 = arith.constant 1 : index
    %c0_11 = arith.constant 0 : index
    %c0_12 = arith.constant 0 : index
    %20 = vector.load %arg4[%c1, %c0_11, %c0_12] : memref<4x128x128xbf16, #tpu.memory_space<vmem>>, vector<1x128x128xbf16>
    %21 = vector.shape_cast %20 : vector<1x128x128xbf16> to vector<128x128xbf16>
    %cst_13 = arith.constant dense<0.000000e+00> : vector<16x128xf32>
    %22 = tpu.matmul %19, %21, %cst_13 {dimension_numbers = #tpu.dot_dimension_numbers<[1], [0], [0], [1], [0, 0, 1, 1], [], []>} : vector<16x128xbf16>, vector<128x128xbf16>, vector<16x128xf32> -> vector<16x128xf32>
    %23 = math.tanh %22 : vector<16x128xf32>
    %24 = arith.truncf %23 : vector<16x128xf32> to vector<16x128xbf16>
    %c2 = arith.constant 2 : index
    %c0_14 = arith.constant 0 : index
    %c0_15 = arith.constant 0 : index
    %25 = vector.load %arg4[%c2, %c0_14, %c0_15] : memref<4x128x128xbf16, #tpu.memory_space<vmem>>, vector<1x128x128xbf16>
    %26 = vector.shape_cast %25 : vector<1x128x128xbf16> to vector<128x128xbf16>
    %cst_16 = arith.constant dense<0.000000e+00> : vector<16x128xf32>
    %27 = tpu.matmul %24, %26, %cst_16 {dimension_numbers = #tpu.dot_dimension_numbers<[1], [0], [0], [1], [0, 0, 1, 1], [], []>} : vector<16x128xbf16>, vector<128x128xbf16>, vector<16x128xf32> -> vector<16x128xf32>
    %28 = math.tanh %27 : vector<16x128xf32>
    %29 = arith.truncf %28 : vector<16x128xf32> to vector<16x128xbf16>
    %c3 = arith.constant 3 : index
    %c0_17 = arith.constant 0 : index
    %c0_18 = arith.constant 0 : index
    %30 = vector.load %arg4[%c3, %c0_17, %c0_18] : memref<4x128x128xbf16, #tpu.memory_space<vmem>>, vector<1x128x128xbf16>
    %31 = vector.shape_cast %30 : vector<1x128x128xbf16> to vector<128x128xbf16>
    %cst_19 = arith.constant dense<0.000000e+00> : vector<16x128xf32>
    %32 = tpu.matmul %29, %31, %cst_19 {dimension_numbers = #tpu.dot_dimension_numbers<[1], [0], [0], [1], [0, 0, 1, 1], [], []>} : vector<16x128xbf16>, vector<128x128xbf16>, vector<16x128xf32> -> vector<16x128xf32>
    %33 = math.tanh %32 : vector<16x128xf32>
    %34 = arith.addf %18, %33 : vector<16x128xf32>
    %cst_20 = arith.constant 5.000000e-01 : f32
    %35 = vector.broadcast %cst_20 : f32 to vector<16x128xf32>
    %36 = arith.mulf %34, %35 : vector<16x128xf32>
    %c0_21 = arith.constant 0 : index
    %c0_22 = arith.constant 0 : index
    %c0_23 = arith.constant 0 : index
    %37 = vector.load %arg6[%c0_21, %c0_22, %c0_23] : memref<1x16x128xf32, #tpu.memory_space<vmem>>, vector<1x16x128xf32>
    %38 = vector.shape_cast %37 : vector<1x16x128xf32> to vector<16x128xf32>
    %39 = vector.shape_cast %36 : vector<16x128xf32> to vector<1x16x128xf32>
    tpu.vector_store %arg6[%c0_21, %c0_22, %c0_23], %39 {strides = array<i32>} : memref<1x16x128xf32, #tpu.memory_space<vmem>>, vector<1x16x128xf32>,
    %40 = vector.extract_strided_slice %36 {offsets = [0, 0], sizes = [8, 128], strides = [1, 1]} : vector<16x128xf32> to vector<8x128xf32>
    %41 = vector.extract_strided_slice %36 {offsets = [8, 0], sizes = [8, 128], strides = [1, 1]} : vector<16x128xf32> to vector<8x128xf32>
    %42 = arith.mulf %40, %41 : vector<8x128xf32>
    %cst_24 = arith.constant dense<0.000000e+00> : vector<8xf32>
    %43 = vector.multi_reduction <add>, %42, %cst_24 [1] : vector<8x128xf32> to vector<8xf32>
    %44 = vector.shape_cast %43 : vector<8xf32> to vector<8x1xf32>
    %45 = arith.mulf %40, %40 : vector<8x128xf32>
    %cst_25 = arith.constant dense<0.000000e+00> : vector<8xf32>
    %46 = vector.multi_reduction <add>, %45, %cst_25 [1] : vector<8x128xf32> to vector<8xf32>
    %47 = vector.shape_cast %46 : vector<8xf32> to vector<8x1xf32>
    %48 = math.sqrt %47 : vector<8x1xf32>
    %49 = arith.mulf %41, %41 : vector<8x128xf32>
    %cst_26 = arith.constant dense<0.000000e+00> : vector<8xf32>
    %50 = vector.multi_reduction <add>, %49, %cst_26 [1] : vector<8x128xf32> to vector<8xf32>
    %51 = vector.shape_cast %50 : vector<8xf32> to vector<8x1xf32>
    %52 = math.sqrt %51 : vector<8x1xf32>
    %53 = arith.mulf %48, %52 : vector<8x1xf32>
    %cst_27 = arith.constant 9.99999993E-9 : f32
    %54 = vector.broadcast %cst_27 : f32 to vector<8x1xf32>
    %55 = arith.maximumf %53, %54 : vector<8x1xf32>
    %56 = arith.divf %44, %55 : vector<8x1xf32>
    %cst_28 = arith.constant 2.000000e+01 : f32
    %57 = vector.broadcast %cst_28 : f32 to vector<8x1xf32>
    %58 = arith.mulf %56, %57 : vector<8x1xf32>
    %cst_29 = arith.constant 1.000000e+00 : f32
    %59 = vector.broadcast %cst_29 : f32 to vector<8x1xf32>
    %cst_30 = arith.constant dense<0.000000e+00> : vector<8x8xf32>
    %60 = tpu.matmul %58, %59, %cst_30 {dimension_numbers = #tpu.dot_dimension_numbers<[1], [1], [0], [0], [0, 0, 1, 0], [], []>} : vector<8x1xf32>, vector<8x1xf32>, vector<8x8xf32> -> vector<8x8xf32>
    %cst_31 = arith.constant dense<0.000000e+00> : vector<8x8xf32>
    %61 = tpu.matmul %59, %58, %cst_31 {dimension_numbers = #tpu.dot_dimension_numbers<[1], [1], [0], [0], [0, 0, 1, 0], [], []>} : vector<8x1xf32>, vector<8x1xf32>, vector<8x8xf32> -> vector<8x8xf32>
    %62 = arith.subf %60, %61 : vector<8x8xf32>
    %c0_32 = arith.constant 0 : index
    %c0_33 = arith.constant 0 : index
    %c0_34 = arith.constant 0 : index
    %63 = vector.load %arg5[%c0_32, %c0_33, %c0_34] : memref<1x8x1xf32, #tpu.memory_space<vmem>>, vector<1x8x1xf32>
    %64 = vector.shape_cast %63 : vector<1x8x1xf32> to vector<8x1xf32>
    %cst_35 = arith.constant dense<0.000000e+00> : vector<8x8xf32>
    %65 = tpu.matmul %64, %59, %cst_35 {dimension_numbers = #tpu.dot_dimension_numbers<[1], [1], [0], [0], [0, 0, 1, 0], [], []>} : vector<8x1xf32>, vector<8x1xf32>, vector<8x8xf32> -> vector<8x8xf32>
    %cst_36 = arith.constant dense<0.000000e+00> : vector<8x8xf32>
    %66 = tpu.matmul %59, %64, %cst_36 {dimension_numbers = #tpu.dot_dimension_numbers<[1], [1], [0], [0], [0, 0, 1, 0], [], []>} : vector<8x1xf32>, vector<8x1xf32>, vector<8x8xf32> -> vector<8x8xf32>
    %67 = arith.cmpf olt, %65, %66 : vector<8x8xf32>
    %cst_37 = arith.constant 9.99999995E+11 : f32
    %68 = vector.broadcast %cst_37 : f32 to vector<8x8xf32>
    %69 = arith.subf %62, %68 : vector<8x8xf32>
    %70 = arith.select %67, %62, %69 : vector<8x8xi1>, vector<8x8xf32>
    %71 = vector.shape_cast %70 : vector<8x8xf32> to vector<1x8x8xf32>
    %cst_38 = arith.constant dense<0xFF800000> : vector<1xf32>
    %72 = vector.multi_reduction <maximumf>, %71, %cst_38 [1, 2] : vector<1x8x8xf32> to vector<1xf32>
    %73 = vector.shape_cast %72 : vector<1xf32> to vector<1x1x1xf32>
    %74 = vector.extract %73[0, 0, 0] : f32 from vector<1x1x1xf32>
    %75 = vector.broadcast %74 : f32 to vector<8x8xf32>
    %76 = arith.subf %70, %75 : vector<8x8xf32>
    %77 = math.exp %76 : vector<8x8xf32>
    %78 = vector.shape_cast %77 : vector<8x8xf32> to vector<1x8x8xf32>
    %cst_39 = arith.constant dense<0.000000e+00> : vector<1xf32>
    %79 = vector.multi_reduction <add>, %78, %cst_39 [1, 2] : vector<1x8x8xf32> to vector<1xf32>
    %80 = vector.shape_cast %79 : vector<1xf32> to vector<1x1x1xf32>
    %81 = vector.extract %80[0, 0, 0] : f32 from vector<1x1x1xf32>
    %82 = math.log %81 : f32
    %83 = arith.addf %74, %82 : f32
    %84 = vector.broadcast %83 : f32 to vector<1x1x1xf32>
    %c0_40 = arith.constant 0 : index
    %c0_41 = arith.constant 0 : index
    %c0_42 = arith.constant 0 : index
    %85 = vector.load %arg7[%c0_40, %c0_41, %c0_42] : memref<1x1x1xf32, #tpu.memory_space<vmem>>, vector<1x1x1xf32>
    tpu.vector_store %arg7[%c0_40, %c0_41, %c0_42], %84 {strides = array<i32>} : memref<1x1x1xf32, #tpu.memory_space<vmem>>, vector<1x1x1xf32>,
    return
  }
  func.func @transform_0(%arg0: i32) -> (i32, i32, i32) {
    %c0_i32 = arith.constant 0 : i32
    %c0_i32_0 = arith.constant 0 : i32
    %c0_i32_1 = arith.constant 0 : i32
    return %arg0, %c0_i32, %c0_i32_0 : i32, i32, i32
  }
  func.func @transform_1(%arg0: i32) -> (i32, i32, i32) {
    %c0_i32 = arith.constant 0 : i32
    %c0_i32_0 = arith.constant 0 : i32
    %c0_i32_1 = arith.constant 0 : i32
    return %arg0, %c0_i32, %c0_i32_0 : i32, i32, i32
  }
  func.func @transform_2(%arg0: i32) -> (i32, i32) {
    %c0_i32 = arith.constant 0 : i32
    %c0_i32_0 = arith.constant 0 : i32
    %c0_i32_1 = arith.constant 0 : i32
    return %c0_i32, %c0_i32_0 : i32, i32
  }
  func.func @transform_3(%arg0: i32) -> (i32, i32, i32) {
    %c0_i32 = arith.constant 0 : i32
    %c0_i32_0 = arith.constant 0 : i32
    %c0_i32_1 = arith.constant 0 : i32
    %c0_i32_2 = arith.constant 0 : i32
    return %c0_i32, %c0_i32_0, %c0_i32_1 : i32, i32, i32
  }
  func.func @transform_4(%arg0: i32) -> (i32, i32, i32) {
    %c0_i32 = arith.constant 0 : i32
    %c0_i32_0 = arith.constant 0 : i32
    %c0_i32_1 = arith.constant 0 : i32
    return %arg0, %c0_i32, %c0_i32_0 : i32, i32, i32
  }
  func.func @transform_5(%arg0: i32) -> (i32, i32, i32) {
    %c0_i32 = arith.constant 0 : i32
    %c0_i32_0 = arith.constant 0 : i32
    %c0_i32_1 = arith.constant 0 : i32
    return %arg0, %c0_i32, %c0_i32_0 : i32, i32, i32
  }
  func.func @transform_6(%arg0: i32) -> (i32, i32, i32) {
    %c0_i32 = arith.constant 0 : i32
    %c0_i32_0 = arith.constant 0 : i32
    %c0_i32_1 = arith.constant 0 : i32
    return %arg0, %c0_i32, %c0_i32_0 : i32, i32, i32
  }
}

</mosaic_0001>

<bundles_post_ra>
// kernel: tpu_custom_call.1
= control target key start
LH: loop header
LB: loop body
LE: loop exit
PB: predicated region body
PF: predicated region fallthrough
CT: control target
= control target key end

     0   :  { %12 = vsyncpa [#allocation3], 0  ;;  %s1106_s0 = inlined_call_operand.vmem [shape: s32[1,8,8], index: 0, kind: input, shape index: {}]   ;;  %s1107_s1 = inlined_call_operand.hbm [shape: s32[1,8,8], index: 1, kind: input, shape index: {}]   ;;  %s1108_s2 = inlined_call_operand.hbm [shape: bf16[32,128], index: 2, kind: input, shape index: {}]   ;;  %s1109_s3 = inlined_call_operand.hbm [shape: bf16[4,128,128], index: 3, kind: input, shape index: {}]   ;;  %s1110_s4 = inlined_call_operand.vmem [shape: f32[1,8,1], index: 4, kind: input, shape index: {}]   ;;  %s1111_s5 = inlined_call_operand.hbm [shape: f32[1,16,128], index: 5, kind: output, shape index: {0}]   ;;  %s1112_s6 = inlined_call_operand.hbm [shape: f32[1,1,1], index: 6, kind: output, shape index: {1}]  }
   0x1   :  { %13 = vsyncpa [#allocation6], 0 }
   0x2   :  { %14 = vsyncpa [#allocation4], 0  ;;  %s33_s23 = sshll.u32 %s1108_s2, 4  ;;  %s34_s23 = int_to_ptr.hbm [resolvable:$true] %s33_s23 }
   0x3   :  { %15 = vsyncpa [#allocation10], 0  ;;  %s1024_s24 = smov [#allocation5]   ;;  %s23_s28 = sshll.u32 %s1107_s1, 4  ;;  %s24_s28 = int_to_ptr.hbm [resolvable:$true] %s23_s28 }
   0x4   :  { %s35_s25 = sshll.u32 %s1024_s24, 4  ;;  %s1025_s29 = smov 64   ;;  %s36_s25 = int_to_ptr.vmem [resolvable:$true] %s35_s25 }
   0x5   :  { %s1026_s30 = smov 4   ;;  %s1027_s7 = smov [#allocation2]  }
   0x6   :  { %41 = dma.hbm_to_vmem [thread:$0]  %s34_s23, 256, %s36_s25, [#allocation6], %s1025_s29, %s1025_s29, %s1026_s30  }
   0x7   :  { %s25_s8 = sshll.u32 %s1027_s7, 4  ;;  %s46_s11 = sshll.u32 %s1109_s3, 4  ;;  %s26_s8 = int_to_ptr.vmem [resolvable:$true] %s25_s8  ;;  %s47_s11 = int_to_ptr.hbm [resolvable:$true] %s46_s11 }
   0x8   :  { %28 = dma.hbm_to_vmem [thread:$0]  %s24_s28, 128, %s26_s8, [#allocation3]  }
   0x9   :  { %s1028_s2 = smov [#allocation7]  }
   0xa   :  { %s48_s12 = sshll.u32 %s1028_s2, 4  ;;  %s49_s12 = int_to_ptr.vmem [resolvable:$true] %s48_s12 }
   0xb   :  { %54 = dma.hbm_to_vmem [thread:$0]  %s47_s11, 4096, %s49_s12, [#allocation6], %s1025_s29, %s1025_s29, %s1026_s30  }
   0xc   :  { %1016 = dma.done.wait [#allocation3], 128  }
   0xd   :  { %1017 = vsyncadd [#allocation3], 4294967168 }
   0xe   :  { %1018 = dma.done.wait [#allocation6], 4352  }
   0xf   :  { %1019 = vsyncadd [#allocation6], 4294962944  ;;  %v1029_v0 = vmov 7   ;;  %v70_v1 = vld [vmem:[%s1106_s0] sm:$0xff]  ;;  %v818_v3 = vld [vmem:[#allocation5 + $0x8] sm:$0xff]  ;;  %v72_v10 = vlaneseq  ;;  %v1030_v14 = vmov 0.0  }
  0x10   :  { %869 = vset.pattern.permute.xlu0 %v1029_v0  ;;  %v71_v2 = vld [vmem:[#allocation2] sm:$0xff]  ;;  %113 = vmatpush.bf16.msra.mxu0 %v818_v3  ;;  %v817_v4 = vld [vmem:[#allocation5] sm:$0xff]  ;;  %v826_v5 = vld [vmem:[#allocation7 + $0x38] sm:$0xff]  ;;  %vm103_vm2 = vcmask 261120   ;;  %vm505_vm3 = vcmask 7168   ;;  %vm600_vm13 = vcmask 64512  }
  0x11   :  { %75 = vperm.xlu0 %869, %v70_v1   ;;  %186 = vmatpush.bf16.msra.mxu1 %v826_v5  ;;  %v825_v6 = vld [vmem:[#allocation7 + $0x30] sm:$0xff]  ;;  %v824_v7 = vld [vmem:[#allocation7 + $0x28] sm:$0xff]  ;;  %v823_v8 = vld [vmem:[#allocation7 + $0x20] sm:$0xff]  ;;  %v73_v12 = vand.u32 127, %v72_v10  ;;  %s1032_s14 = smov [#allocation8]   ;;  %s639_s18 = sshll.u32 %s1111_s5, 4  ;;  %s640_s18 = int_to_ptr.hbm [resolvable:$true] %s639_s18 }
  0x12   :  { %v822_v9 = vld [vmem:[#allocation7 + $0x18] sm:$0xff]  ;;  %v821_v18 = vld [vmem:[#allocation7 + $0x10] sm:$0xff]  ;;  %v820_v19 = vld [vmem:[#allocation7 + $0x8] sm:$0xff]  ;;  %s637_s15 = sshll.u32 %s1032_s14, 4  ;;  %s1033_s19 = smov 128   ;;  %vm631_vm14 = vcmask 0   ;;  %s638_s15 = int_to_ptr.vmem [resolvable:$true] %s637_s15 }
  0x13   :  { %v819_v20 = vld [vmem:[#allocation7] sm:$0xff]  ;;  %v834_v21 = vld [vmem:[#allocation7 + $0x78] sm:$0xff]  ;;  %v833_v22 = vld [vmem:[#allocation7 + $0x70] sm:$0xff]  ;;  %s1034_s20 = smov 8   ;;  %s1035_s5 = smov [#allocation9]  }
  0x14   :  { %114 = vmatpush.bf16.msra.mxu0 %v817_v4  ;;  %268 = vmatpush.bf16.msra.mxu2 %v834_v21  ;;  %v832_v23 = vld [vmem:[#allocation7 + $0x68] sm:$0xff]  ;;  %v831_v24 = vld [vmem:[#allocation7 + $0x60] sm:$0xff]  ;;  %v830_v28 = vld [vmem:[#allocation7 + $0x58] sm:$0xff]  ;;  %s651_s22 = sshll.u32 %s1035_s5, 4  ;;  %s653_s25 = sshll.u32 %s1112_s6, 4  ;;  %s652_s22 = int_to_ptr.vmem [resolvable:$true] %s651_s22  ;;  %s654_s25 = int_to_ptr.hbm [resolvable:$true] %s653_s25 }
  0x15   :  { %187 = vmatpush.bf16.msra.mxu1 %v825_v6  ;;  %v829_v29 = vld [vmem:[#allocation7 + $0x50] sm:$0xff]  ;;  %v828_v30 = vld [vmem:[#allocation7 + $0x48] sm:$0xff]  ;;  %v827_v31 = vld [vmem:[#allocation7 + $0x40] sm:$0xff] }
  0x16   :  { %v842_v32 = vld [vmem:[#allocation7 + $0xb8] sm:$0xff]  ;;  %v841_v33 = vld [vmem:[#allocation7 + $0xb0] sm:$0xff]  ;;  %v840_v34 = vld [vmem:[#allocation7 + $0xa8] sm:$0xff] }
  0x17   :  { %350 = vmatpush.bf16.msra.mxu3 %v842_v32  ;;  %v839_v35 = vld [vmem:[#allocation7 + $0xa0] sm:$0xff]  ;;  %v838_v41 = vld [vmem:[#allocation7 + $0x98] sm:$0xff]  ;;  %v837_v42 = vld [vmem:[#allocation7 + $0x90] sm:$0xff] }
  0x18   :  { %269 = vmatpush.bf16.msra.mxu2 %v833_v22  ;;  %v836_v43 = vld [vmem:[#allocation7 + $0x88] sm:$0xff]  ;;  %v835_v44 = vld [vmem:[#allocation7 + $0x80] sm:$0xff]  ;;  %v850_v45 = vld [vmem:[#allocation7 + $0xf8] sm:$0xff]  ;;  %v1031_v22 = vmov 1.0  }
  0x19   :  { %78 = vperm.xlu0 %869, %v71_v2   ;;  %188 = vmatpush.bf16.msra.mxu1 %v824_v7  ;;  %v849_v46 = vld [vmem:[#allocation7 + $0xf0] sm:$0xff]  ;;  %v848_v47 = vld [vmem:[#allocation7 + $0xe8] sm:$0xff]  ;;  %v847_v48 = vld [vmem:[#allocation7 + $0xe0] sm:$0xff] }
  0x1a   :  { %432 = vmatpush.bf16.msrb.mxu0 %v850_v45  ;;  %v846_v54 = vld [vmem:[#allocation7 + $0xd8] sm:$0xff]  ;;  %v845_v55 = vld [vmem:[#allocation7 + $0xd0] sm:$0xff]  ;;  %v844_v56 = vld [vmem:[#allocation7 + $0xc8] sm:$0xff] }
  0x1b   :  { %351 = vmatpush.bf16.msra.mxu3 %v841_v33  ;;  %v843_v57 = vld [vmem:[#allocation7 + $0xc0] sm:$0xff] }
  0x1c   :  { %270 = vmatpush.bf16.msra.mxu2 %v832_v23 }
  0x1d   :  { %189 = vmatpush.bf16.msra.mxu1 %v823_v8 }
  0x1e   :  { %433 = vmatpush.bf16.msrb.mxu0 %v849_v46 }
  0x1f   :  { %352 = vmatpush.bf16.msra.mxu3 %v840_v34 }
  0x20   :  { %271 = vmatpush.bf16.msra.mxu2 %v831_v24 }
  0x21   :  { %190 = vmatpush.bf16.msra.mxu1 %v822_v9 }
  0x22   :  { %434 = vmatpush.bf16.msrb.mxu0 %v848_v47 }
  0x23   :  { %353 = vmatpush.bf16.msra.mxu3 %v839_v35 }
  0x24   :  { %272 = vmatpush.bf16.msra.mxu2 %v830_v28  ;;  %v553_v28 = vld [vmem:[%s1110_s4] sm:$0xff] }
  0x25   :  { %191 = vmatpush.bf16.msra.mxu1 %v821_v18 }
  0x26   :  { %435 = vmatpush.bf16.msrb.mxu0 %v847_v48 }
  0x27   :  { %354 = vmatpush.bf16.msra.mxu3 %v838_v41 }
  0x28   :  { %273 = vmatpush.bf16.msra.mxu2 %v829_v29 }
  0x29   :  { %192 = vmatpush.bf16.msra.mxu1 %v820_v19 }
  0x2a   :  { %436 = vmatpush.bf16.msrb.mxu0 %v846_v54 }
  0x2b   :  { %355 = vmatpush.bf16.msra.mxu3 %v837_v42 }
  0x2c   :  { %274 = vmatpush.bf16.msra.mxu2 %v828_v30 }
  0x2d   :  { %193 = vmatpush.bf16.msra.mxu1 %v819_v20 }
  0x2e   :  { %437 = vmatpush.bf16.msrb.mxu0 %v845_v55 }
  0x2f   :  { %356 = vmatpush.bf16.msra.mxu3 %v836_v43 }
  0x30   :  { %275 = vmatpush.bf16.msra.mxu2 %v827_v31 }
  0x31   :  { %808 = vmatpush.xpose.msk.msrb.mxu1 %vm505_vm3, %v1031_v22 }
  0x32   :  { %438 = vmatpush.bf16.msrb.mxu0 %v844_v56 }
  0x33   :  { %357 = vmatpush.bf16.msra.mxu3 %v835_v44 }
  0x36   :  { %439 = vmatpush.bf16.msrb.mxu0 %v843_v57 }
  0x37   :  { %812 = vmatpush.xpose.msk.msrb.mxu3 %vm505_vm3, %v1031_v22 }
  0x83   :  { %v76_v11 = vpop.permute.xlu0 %75 }
  0x84   :  { %vm80_vm0 = vcmp.eq.s32.totalorder %v73_v12, %v76_v11 }
  0x85   :  { %v669_v15 = vsel %vm80_vm0, 1.0, %v1030_v14 }
  0x8b   :  { %v79_v13 = vpop.permute.xlu0 %78 }
  0x8c   :  { %vm81_vm1 = vcmp.eq.s32.totalorder %v73_v12, %v79_v13 }
  0x8d   :  { %v670_v16 = vsel %vm81_vm1, 1.0, %v1030_v14 }
  0x8e   :  { %v86_v17 = vpack.c.bf16 %v670_v16, %v669_v15 }
  0x90   :  { %679 = vmatmul.msk.bf16.vlgmr.msra.gmra.mxu0 %vm103_vm2, %v86_v17 }
  0x91   :  { %814 = vmatpush.xpose.msk.msra.mxu0 %vm505_vm3, %v553_v28 }
 0x10d   :  { %v116_v25 = vpop.f32.mrf.mxu0 }
 0x115   :  { %v118_v26 = vpop.f32.mrf.mxu0 }
 0x116   :  { %v121_v27 = vpack.c.bf16 %v118_v26, %v116_v25 }
 0x118   :  { %194 = vmatmul.bf16.vlgmr.msra.gmra.mxu1 %v121_v27 }
 0x195   :  { %v195_v36 = vpop.f32.mrf.mxu1 }
 0x196   :  { %870 = vtanh.f32 %v195_v36 }
 0x19c   :  { %v871_v38 = vpop.eup %870 }
 0x19d   :  { %v197_v37 = vpop.f32.mrf.mxu1 }
 0x19e   :  { %872 = vtanh.f32 %v197_v37 }
 0x1a4   :  { %v873_v39 = vpop.eup %872 }
 0x1a5   :  { %v202_v40 = vpack.c.bf16 %v873_v39, %v871_v38 }
 0x1a7   :  { %276 = vmatmul.bf16.vlgmr.msra.gmra.mxu2 %v202_v40 }
 0x22a   :  { %v277_v49 = vpop.f32.mrf.mxu2 }
 0x22b   :  { %874 = vtanh.f32 %v277_v49 }
 0x231   :  { %v875_v51 = vpop.eup %874 }
 0x232   :  { %v279_v50 = vpop.f32.mrf.mxu2 }
 0x233   :  { %876 = vtanh.f32 %v279_v50 }
 0x239   :  { %v877_v52 = vpop.eup %876 }
 0x23a   :  { %v284_v53 = vpack.c.bf16 %v877_v52, %v875_v51 }
 0x23c   :  { %358 = vmatmul.bf16.vlgmr.msra.gmra.mxu3 %v284_v53 }
 0x24c   :  { %813 = vmatmul.msk.f32.vlgmr.msrb.gmra.mxu3 %vm505_vm3, %v553_v28 }
 0x2bf   :  { %v359_v58 = vpop.f32.mrf.mxu3 }
 0x2c0   :  { %878 = vtanh.f32 %v359_v58 }
 0x2c6   :  { %v879_v60 = vpop.eup %878 }
 0x2c7   :  { %v361_v59 = vpop.f32.mrf.mxu3 }
 0x2c8   :  { %880 = vtanh.f32 %v361_v59 }
 0x2ce   :  { %v881_v61 = vpop.eup %880 }
 0x2cf   :  { %v366_v62 = vpack.c.bf16 %v881_v61, %v879_v60  ;;  %v574_v49 = vpop.f32.mrf.mxu3 }
 0x2d1   :  { %440 = vmatmul.bf16.vlgmr.msrb.gmra.mxu0 %v366_v62 }
 0x2e1   :  { %815 = vmatmul.msk.f32.vlgmr.msra.gmra.mxu0 %vm505_vm3, %v1031_v22 }
 0x34e   :  { %v441_v63 = vpop.f32.mrf.mxu0 }
 0x34f   :  { %882 = vtanh.f32 %v441_v63 }
 0x355   :  { %v883_v0 = vpop.eup %882 }
 0x356   :  { %v443_v1 = vpop.f32.mrf.mxu0  ;;  %v448_v2 = vadd.f32 %v883_v0, %v871_v38 }
 0x357   :  { %884 = vtanh.f32 %v443_v1 }
 0x358   :  { %v450_v3 = vmul.f32 0.5, %v448_v2 }
 0x35a   :  { %v457_v4 = vmul.f32 %v450_v3, %v450_v3  ;;  %452 = vst [vmem:[#allocation8] sm:$0xff] %v450_v3 }
 0x35c   :  { %458 = vadd.xlane.f32.xlu1 %v457_v4 }
 0x35d   :  { %v885_v5 = vpop.eup %884 }
 0x35e   :  { %v449_v6 = vadd.f32 %v885_v5, %v873_v39  ;;  %v594_v50 = vpop.f32.mrf.mxu0 }
 0x35f   :  { %vm597_vm12 = vcmp.lt.f32.partialorder %v574_v49, %v594_v50 }
 0x360   :  { %v451_v7 = vmul.f32 0.5, %v449_v6 }
 0x362   :  { %v472_v8 = vmul.f32 %v451_v7, %v451_v7  ;;  %453 = vst [vmem:[#allocation8 + $0x8] sm:$0xff] %v451_v7  ;;  %v454_v9 = vmul.f32 %v451_v7, %v450_v3 }
 0x363   :  { %645 = dma.vmem_to_hbm [thread:$0]  %s638_s15, 256, %s640_s18, [#allocation4], %s1033_s19, %s1033_s19, %s1034_s20  }
 0x364   :  { %473 = vadd.xlane.f32.xlu1 %v472_v8  ;;  %455 = vadd.xlane.f32.xlu2 %v454_v9 }
 0x3cf   :  { %v459_v10 = vpop.xlane.xlu1 %458 }
 0x3d0   :  { %886 = vrsqrt.f32 %v459_v10  ;;  %vm467_vm4 = vcmp.eq.f32.partialorder %v459_v10, inf  ;;  %v470_v29 = vand.u32 2147483648, %v459_v10  ;;  %vm469_vm6 = vcmp.eq.f32.partialorder %v459_v10, 0.0 }
 0x3d6   :  { %v887_v11 = vpop.eup %886 }
 0x3d7   :  { %v461_v12 = vmul.f32 %v887_v11, %v459_v10  ;;  %v474_v13 = vpop.xlane.xlu1 %473  ;;  %v456_v46 = vpop.xlane.xlu2 %455 }
 0x3d8   :  { %888 = vrsqrt.f32 %v474_v13  ;;  %vm482_vm5 = vcmp.eq.f32.partialorder %v474_v13, inf  ;;  %v485_v30 = vand.u32 2147483648, %v474_v13  ;;  %vm484_vm7 = vcmp.eq.f32.partialorder %v474_v13, 0.0 }
 0x3d9   :  { %v462_v14 = vmul.f32 %v887_v11, %v461_v12 }
 0x3db   :  { %v463_v15 = vmul.f32 0.5, %v462_v14 }
 0x3dd   :  { %v464_v16 = vsub.f32 1.5, %v463_v15 }
 0x3de   :  { %v889_v17 = vpop.eup %888 }
 0x3df   :  { %v476_v18 = vmul.f32 %v889_v17, %v474_v13  ;;  %v465_v19 = vmul.f32 %v887_v11, %v464_v16 }
 0x3e1   :  { %v477_v20 = vmul.f32 %v889_v17, %v476_v18  ;;  %v466_v23 = vmul.f32 %v465_v19, %v459_v10 }
 0x3e3   :  { %v478_v21 = vmul.f32 0.5, %v477_v20  ;;  %v468_v26 = vsel %vm467_vm4, %v459_v10, %v466_v23 }
 0x3e4   :  { %v471_v32 = vsel %vm469_vm6, %v470_v29, %v468_v26 }
 0x3e5   :  { %v479_v24 = vsub.f32 1.5, %v478_v21 }
 0x3e7   :  { %v480_v25 = vmul.f32 %v889_v17, %v479_v24 }
 0x3e9   :  { %v481_v27 = vmul.f32 %v480_v25, %v474_v13 }
 0x3eb   :  { %v483_v31 = vsel %vm482_vm5, %v474_v13, %v481_v27 }
 0x3ec   :  { %v486_v33 = vsel %vm484_vm7, %v485_v30, %v483_v31 }
 0x3ed   :  { %v487_v34 = vmul.f32 %v486_v33, %v471_v32 }
 0x3ef   :  { %v488_v35 = vmax.f32 %v487_v34, 1e-08 }
 0x3f1   :  { %890 = vrcp.f32 %v488_v35  ;;  %v500_v39 = vand.u32 2147483648, %v488_v35  ;;  %v498_v41 = vand.u32 2147483647, %v488_v35  ;;  %vm494_vm9 = vweird.f32 %v488_v35 }
 0x3f3   :  { %v501_v43 = vor.u32 1.1754944e-38, %v500_v39  ;;  %vm499_vm11 = vcmp.eq.f32.partialorder %v498_v41, 8.507059e+37 }
 0x3f7   :  { %v891_v36 = vpop.eup %890 }
 0x3f8   :  { %v490_v37 = vmul.f32 %v891_v36, %v488_v35  ;;  %vm495_vm8 = vweird.f32 %v891_v36 }
 0x3f9   :  { %vm496_vm10 = vmor %vm494_vm9, %vm495_vm8 }
 0x3fa   :  { %v491_v38 = vsub.f32 1.0, %v490_v37 }
 0x3fc   :  { %v492_v40 = vmul.f32 %v891_v36, %v491_v38 }
 0x3fe   :  { %v493_v42 = vadd.f32 %v891_v36, %v492_v40 }
 0x400   :  { %v497_v44 = vsel %vm496_vm10, %v891_v36, %v493_v42 }
 0x401   :  { %v502_v45 = vsel %vm499_vm11, %v501_v43, %v497_v44 }
 0x402   :  { %v503_v47 = vmul.f32 %v502_v45, %v456_v46 }
 0x404   :  { %v504_v48 = vmul.f32 20.0, %v503_v47 }
 0x406   :  { %809 = vmatmul.msk.f32.vlgmr.msrb.gmra.mxu1 %vm505_vm3, %v504_v48  ;;  %810 = vmatpush.xpose.msk.msrb.mxu2 %vm505_vm3, %v504_v48 }
 0x409   :  { %811 = vmatmul.msk.f32.vlgmr.msrb.gmra.mxu2 %vm505_vm3, %v1031_v22 }
 0x483   :  { %v529_v51 = vpop.f32.mrf.mxu1 }
 0x48c   :  { %v549_v52 = vpop.f32.mrf.mxu2 }
 0x48d   :  { %v552_v53 = vsub.f32 %v529_v51, %v549_v52 }
 0x48f   :  { %v816_v54 = vadd.f32 -1e+12, %v552_v53 }
 0x491   :  { %v599_v55 = vsel %vm597_vm12, %v552_v53, %v816_v54 }
 0x492   :  { %v601_v56 = vsel %vm600_vm13, %v599_v55, -inf }
 0x493   :  { %602 = vmax.xlane.f32.xlu2 %v601_v56 }
 0x506   :  { %v603_v57 = vpop.xlane.xlu2 %602 }
 0x507   :  { %v604_v58 = vrot.slane %v603_v57, 4 }
 0x509   :  { %v605_v59 = vmax.f32 %v603_v57, %v604_v58 }
 0x50b   :  { %v606_v60 = vrot.slane %v605_v59, 2 }
 0x50d   :  { %v607_v61 = vmax.f32 %v605_v59, %v606_v60 }
 0x50f   :  { %v608_v62 = vrot.slane %v607_v61, 1 }
 0x511   :  { %v609_v63 = vmax.f32 %v607_v61, %v608_v62 }
 0x513   :  { %851 = vpush %v609_v63 }
 0x544   :  { %s1095_s4 = spop %851 }
 0x545   :  { %v611_v0 = vstv %s1095_s4 }
 0x546   :  { %v612_v1 = vsub.f32 %v599_v55, %v611_v0 }
 0x548   :  { %v613_v2 = vmul.f32 1.442695, %v612_v1 }
 0x54a   :  { %892 = vpow2.f32 %v613_v2 }
 0x550   :  { %v893_v3 = vpop.eup %892 }
 0x551   :  { %v615_v4 = vsel %vm600_vm13, %v893_v3, 0.0 }
 0x552   :  { %616 = vadd.xlane.f32.xlu0 %v615_v4 }
 0x5c5   :  { %v617_v5 = vpop.xlane.xlu0 %616 }
 0x5c6   :  { %v618_v6 = vrot.slane %v617_v5, 4 }
 0x5c8   :  { %v619_v7 = vadd.f32 %v618_v6, %v617_v5 }
 0x5ca   :  { %v620_v8 = vrot.slane %v619_v7, 2 }
 0x5cc   :  { %v621_v9 = vadd.f32 %v620_v8, %v619_v7 }
 0x5ce   :  { %v622_v10 = vrot.slane %v621_v9, 1 }
 0x5d0   :  { %v623_v11 = vadd.f32 %v622_v10, %v621_v9 }
 0x5d2   :  { %853 = vpush %v623_v11 }
 0x603   :  { %s854_s21 = spop %853 }
 0x604   :  { %v625_v12 = vstv %s854_s21 }
 0x605   :  { %894 = vlog2.f32 %v625_v12 }
 0x60b   :  { %v895_v13 = vpop.eup %894 }
 0x60c   :  { %v627_v14 = vmul.f32 0.6931472, %v895_v13 }
 0x60e   :  { %855 = vpush %v627_v14 }
 0x63f   :  { %s856_s26 = spop %855 }
 0x640   :  { %s629_s27 = sadd.f32 %s856_s26, %s1095_s4 }
 0x642   :  { %v630_v15 = vstv %s629_s27 }
 0x643   :  { %632 = vst.msk [vmem:[#allocation9] sm:$0x1] %vm631_vm14, %v630_v15 }
 0x644   :  { %656 = dma.vmem_to_hbm [thread:$0]  %s652_s22, 16, %s654_s25, [#allocation10]  }
 0x645   :  { %1020 = dma.done.wait [#allocation4], 256  }
 0x646   :  { %1021 = vsyncadd [#allocation4], 4294967040 }
 0x647   :  { %1022 = dma.done.wait [#allocation10], 16  }
 0x648   :  { %1023 = vsyncadd [#allocation10], 4294967280 }
 0x649   :  { %665 = vsyncpa [#allocation3], 1 }
 0x64a   :  { %666 = vsyncpa [#allocation6], 1 }
 0x64b   :  { %667 = vsyncpa [#allocation4], 1 }
 0x64c   :  { %668 = vsyncpa [#allocation10], 1 }

</bundles_post_ra>
